<compile_context>
chip_gen: v7x
topology: tpu7x:2x2x1
jax: 0.10.0
libtpu: 0.0.40
codegen_flags: <defaults>
</compile_context>

<pallas_src>
import jax
import jax.numpy as jnp
from jax.experimental import pallas as pl
from jax.experimental.pallas import tpu as pltpu

# ----------------------- small synthetic hyper-params -----------------------
NUM_EMB = 256          # num_embeddings (scaled down from 32000)
EMB_DIM = 128          # embedding_dim  (scaled down from 4096)
VIS_DIM = 128          # vis_dim        (scaled down from 768)
PERC_N = 4             # perceiver_num  (scaled down from 32)
PATCH_SIZE = 8
FRAME_PATCH_SIZE = 4
N_GROUPS = 14          # prototype groups / cls heads (kept exact)
HEAD_PAD = 128         # lane-dense padding for the 2*14 = 28 cls logits

B, S, C, H, W, D = 2, 1, 4, 16, 16, 8
V_TOK = (H // PATCH_SIZE) * (W // PATCH_SIZE) * (D // FRAME_PATCH_SIZE)   # ViT tokens
P_DIM = C * PATCH_SIZE * PATCH_SIZE * FRAME_PATCH_SIZE                    # patch vector
T_TEXT = 8
N_VIS = PERC_N * S                                                        # visual rows / batch
V_TAB = NUM_EMB + 2                                                       # shared text-table rows
V_TOTAL = V_TAB + N_VIS                                                   # per-batch vocab incl. visual


# ================== fused vision kernel (one pallas_call, grid=(B*S,)) ==================

def _vision_fused_kernel(patch_ref, pw_ref, pb_ref, pos_ref, proto_ref,
                         hw_ref, hb_ref, lat_ref, fcw_ref, fcb_ref,
                         vis_ref, cls_ref):
    # ---- patch embedding (bf16 MXU, f32 accumulate) + learned positional embedding ----
    tokens = (jnp.dot(patch_ref[...], pw_ref[...], preferred_element_type=jnp.float32)
              + pb_ref[...] + pos_ref[...])                                   # (V, d) f32
    tokens_bf = tokens.astype(jnp.bfloat16)
    # TODO(synk): the 12-layer / 8-head ViT transformer encoder is an external class not
    # provided in the reference module; only the patch-embedding stage is implemented.

    # ---- prototype softmax over the token axis (f32) + grouped pooling (bf16 MXU) ----
    proto = proto_ref[...]                                                    # (14, V) f32
    p = jnp.exp(proto - jnp.max(proto, axis=-1, keepdims=True))
    p = p / jnp.sum(p, axis=-1, keepdims=True)
    feats = jnp.dot(p.astype(jnp.bfloat16), tokens_bf,
                    preferred_element_type=jnp.float32)                       # (14, d) f32

    # ---- 14 x Linear(d, 2) heads: ONE lane-dense (d, 128)-padded MXU contraction ----
    prod = jnp.dot(feats.astype(jnp.bfloat16), hw_ref[...],
                   preferred_element_type=jnp.float32)                        # (14, 128)
    rows = jax.lax.broadcasted_iota(jnp.int32, prod.shape, 0)
    cols = jax.lax.broadcasted_iota(jnp.int32, prod.shape, 1)
    sel = jnp.logical_or(cols == rows, cols == rows + N_GROUPS).astype(jnp.float32)
    logits = jnp.sum(prod * sel, axis=0, keepdims=True) + hb_ref[...]         # (1, 128) lane-dense
    cls_ref[...] = logits.astype(cls_ref.dtype)

    # ---- PerceiverResampler stand-in + fc projection (bf16 MXU, f32 softmax) ----
    # TODO(synk): PerceiverResampler is an external class not provided; a single latent
    # cross-attention resampling step ((V,d) -> (n,d)) is used as a stand-in.
    att = jax.lax.dot_general(lat_ref[...], tokens_bf, (((1,), (1,)), ((), ())),
                              preferred_element_type=jnp.float32) * (VIS_DIM ** -0.5)
    att = jnp.exp(att - jnp.max(att, axis=-1, keepdims=True))
    att = att / jnp.sum(att, axis=-1, keepdims=True)                          # (n, V) f32
    res = jnp.dot(att.astype(jnp.bfloat16), tokens_bf,
                  preferred_element_type=jnp.float32)                         # (n, d)
    vis = (jnp.dot(res.astype(jnp.bfloat16), fcw_ref[...],
                   preferred_element_type=jnp.float32) + fcb_ref[...])        # (n, Dm)
    vis_ref[...] = vis.astype(vis_ref.dtype)


def vision_fused(patches, patch_w, patch_b, pos_emb, prototype,
                 head_w2, head_b2, latents, fc_w, fc_b):
    BS, V, P = patches.shape
    d = patch_w.shape[1]
    Dm = fc_w.shape[1]
    n = latents.shape[0]
    c_pad = head_w2.shape[1]

    bf = jnp.bfloat16
    patches = patches.astype(bf)          # MXU operands in bf16 (native on v5e/v6e/v7x MXU),
    patch_w = patch_w.astype(bf)          # halves input/weight DMA bytes & VMEM residency;
    head_w2 = head_w2.astype(bf)          # accumulation stays f32 via preferred_element_type,
    latents = latents.astype(bf)          # softmax/exp math stays f32 (no bf16 VPU/EUP on v5e).
    fc_w = fc_w.astype(bf)
    # NOTE(v7x): at production sizes, additionally single-buffer the constant-index weight
    # specs (pipeline_mode=pl.Buffered(1)) and set vmem_limit_bytes for the 64 MiB VMEM.

    return pl.pallas_call(
        _vision_fused_kernel,
        out_shape=(jax.ShapeDtypeStruct((BS, n, Dm), jnp.float32),
                   jax.ShapeDtypeStruct((BS, 1, c_pad), jnp.float32)),
        grid=(BS,),
        in_specs=[
            pl.BlockSpec((pl.Squeezed(), V, P), lambda i: (i, 0, 0)),  # patches (per row)
            pl.BlockSpec((P, d), lambda i: (0, 0)),                    # patch_w (resident)
            pl.BlockSpec((1, d), lambda i: (0, 0)),                    # patch_b
            pl.BlockSpec((V, d), lambda i: (0, 0)),                    # pos_emb
            pl.BlockSpec((N_GROUPS, V), lambda i: (0, 0)),             # prototype
            pl.BlockSpec((d, c_pad), lambda i: (0, 0)),                # head weights (lane-dense)
            pl.BlockSpec((1, c_pad), lambda i: (0, 0)),                # head bias (padded)
            pl.BlockSpec((n, d), lambda i: (0, 0)),                    # perceiver latents
            pl.BlockSpec((d, Dm), lambda i: (0, 0)),                   # fc_w
            pl.BlockSpec((1, Dm), lambda i: (0, 0)),                   # fc_b
        ],
        out_specs=(pl.BlockSpec((pl.Squeezed(), n, Dm), lambda i: (i, 0, 0)),
                   pl.BlockSpec((pl.Squeezed(), 1, c_pad), lambda i: (i, 0, 0))),
        # B*S kept as a parallel grid axis so v7x's 2 TensorCores each take a batch row;
        # on single-TC v5e/v6e it is just a 2-step serial loop over tiny tiles.
        compiler_params=pltpu.CompilerParams(dimension_semantics=("parallel",)),
    )(patches, patch_w, patch_b, pos_emb, prototype,
      head_w2, head_b2, latents, fc_w, fc_b)


# ============== embedding lookup: per-batch row gather from a resident table ==============
# One grid step per batch row; the unified source (text table ++ per-batch visual rows,
# ~136 KiB here) stays resident in VMEM, T rows are gathered with dynamic sublane slices,
# and the (T, Dm) output block is written with a single unmasked store.

def _embed_gather_kernel(ids_ref, src_ref, o_ref):
    b = pl.program_id(0)
    t_len = o_ref.shape[0]
    rows = []
    for t in range(t_len):                       # static unroll (T is small)
        idx = ids_ref[b * t_len + t]
        rows.append(src_ref[pl.ds(idx, 1), :])   # one (1, Dm) dynamic row load
    o_ref[...] = jnp.concatenate(rows, axis=0).astype(o_ref.dtype)


def embed_gather(ids1d, src, t_len):
    n_rows, Dm = src.shape
    Bb = ids1d.shape[0] // t_len
    return pl.pallas_call(
        _embed_gather_kernel,
        out_shape=jax.ShapeDtypeStruct((Bb, t_len, Dm), src.dtype),
        grid_spec=pltpu.PrefetchScalarGridSpec(
            num_scalar_prefetch=1,               # unified row ids land in SMEM
            grid=(Bb,),
            in_specs=[pl.BlockSpec((n_rows, Dm), lambda b, ids: (0, 0))],   # resident source
            out_specs=pl.BlockSpec((pl.Squeezed(), t_len, Dm), lambda b, ids: (b, 0, 0)),
        ),
        # TODO(synk): at production scale (32000 x 4096 table) keep the source in
        # memory_space=pl.ANY and issue pipelined per-row pltpu.make_async_copy gathers.
        compiler_params=pltpu.CompilerParams(dimension_semantics=("parallel",)),
    )(ids1d, src)


# ================================ JAX glue =====================================

def patchify(vision_bs):
    BS, c, h, w, d = vision_bs.shape
    p, fp = PATCH_SIZE, FRAME_PATCH_SIZE
    x = vision_bs.reshape(BS, c, h // p, p, w // p, p, d // fp, fp)
    # 'b c (h p1) (w p2) (f pf) -> b (h w f) (p1 p2 pf c)'
    x = x.transpose(0, 2, 4, 6, 3, 5, 7, 1)
    return x.reshape(BS, V_TOK, P_DIM)


def my_embedding_forward(params, vision_x, text_input, mode=None):
    Bb, Ss = vision_x.shape[:2]
    BS = Bb * Ss
    patches = patchify(vision_x.reshape(BS, *vision_x.shape[2:]))   # '(b S) c h w d'

    # re-pack the 14 Linear(d,2) heads lane-dense: W2[d, c*14+g] = head_w[c, g, d],
    # then zero-pad 28 -> 128 lanes so the heads matmul + cls store are unmasked.
    head_w2 = params['head_w'].transpose(2, 0, 1).reshape(VIS_DIM, 2 * N_GROUPS)
    head_w2 = jnp.pad(head_w2, ((0, 0), (0, HEAD_PAD - 2 * N_GROUPS)))
    head_b2 = jnp.pad(params['head_b'].reshape(1, 2 * N_GROUPS),
                      ((0, 0), (0, HEAD_PAD - 2 * N_GROUPS)))

    vis_emb, cls_pad = vision_fused(
        patches, params['patch_w'], params['patch_b'].reshape(1, VIS_DIM),
        params['pos_emb'], params['prototype'], head_w2, head_b2,
        params['latents'], params['fc_w'], params['fc_b'].reshape(1, EMB_DIM))
    cls_logits = cls_pad[:, 0, :2 * N_GROUPS].reshape(BS, 2, N_GROUPS)   # (B*S, 2, 14)

    # TODO(synk): 'train' / 'cls' contrastive-memory branches (proj, pos/neg memories,
    # temp-scaled similarity) are not implemented; default (mode=None) path only.

    # unified gather source: shared text table ++ ALL per-batch visual rows (ordered b,s,n).
    table = jnp.concatenate([params['weight'], params['figure_token_weight']], axis=0)
    vis_rows = vis_emb.reshape(Bb * Ss * PERC_N, EMB_DIM).astype(table.dtype)
    src = jnp.concatenate([table, vis_rows], axis=0)            # (V_TAB + B*N_VIS, Dm)

    # unified per-batch row index: text id -> id, visual id -> id + b*N_VIS.
    b_idx = jnp.arange(Bb, dtype=jnp.int32)[:, None]
    ids = jnp.where(text_input < V_TAB, text_input, text_input + b_idx * N_VIS)
    # NOTE: out-of-range ids clamp to a real row, whereas the one-hot reference would
    # return zeros; not triggerable with the bounded inputs used here.
    ids = jnp.clip(ids, 0, src.shape[0] - 1).astype(jnp.int32).reshape(-1)

    out_put = embed_gather(ids, src, text_input.shape[1])       # (B, T, Dm)
    return out_put, cls_logits


# ============================ pure-JAX reference ================================

def forward_reference(params, vision_x, text_input):
    hp = jax.lax.Precision.HIGHEST
    Bb, Ss = vision_x.shape[:2]
    BS = Bb * Ss
    patches = patchify(vision_x.reshape(BS, *vision_x.shape[2:]))
    tokens = (jnp.einsum('bvp,pd->bvd', patches, params['patch_w'], precision=hp)
              + params['patch_b'][None, None, :] + params['pos_emb'][None])
    p = jax.nn.softmax(params['prototype'], axis=-1)
    feats = jnp.einsum('gv,bvd->bgd', p, tokens, precision=hp)
    cls = (jnp.einsum('bgd,cgd->bcg', feats, params['head_w'], precision=hp)
           + params['head_b'][None])
    att = jax.nn.softmax(
        jnp.einsum('nd,bvd->bnv', params['latents'], tokens, precision=hp)
        * (1.0 / VIS_DIM ** 0.5), axis=-1)
    res = jnp.einsum('bnv,bvd->bnd', att, tokens, precision=hp)
    vis = jnp.einsum('bnd,de->bne', res, params['fc_w'], precision=hp) + params['fc_b']
    vis = vis.reshape(Bb, Ss * PERC_N, EMB_DIM)
    table = jnp.concatenate([params['weight'], params['figure_token_weight']], axis=0)
    emb = jnp.concatenate(
        [jnp.broadcast_to(table[None], (Bb,) + table.shape), vis], axis=1)
    onehot = jax.nn.one_hot(text_input, emb.shape[1], dtype=jnp.float32)
    out = jnp.einsum('btv,bvd->btd', onehot, emb, precision=hp)
    return out, cls


# ================================ main =========================================

if __name__ == "__main__":
    keys = jax.random.split(jax.random.PRNGKey(0), 14)
    f32 = jnp.float32

    params = {
        'weight': jax.random.normal(keys[0], (NUM_EMB, EMB_DIM), f32),
        'figure_token_weight': jax.random.normal(keys[1], (2, EMB_DIM), f32),
        'prototype': jax.random.normal(keys[2], (N_GROUPS, V_TOK), f32),
        # 14 x nn.Linear(vis_dim, 2); stored pre-permuted as (2, 14, vis_dim) / (2, 14)
        'head_w': jax.random.normal(keys[3], (2, N_GROUPS, VIS_DIM), f32) * 0.02,
        'head_b': jax.random.normal(keys[4], (2, N_GROUPS), f32) * 0.02,
        'fc_w': jax.random.normal(keys[5], (VIS_DIM, EMB_DIM), f32) * 0.02,
        'fc_b': jax.random.normal(keys[6], (EMB_DIM,), f32) * 0.02,
        'patch_w': jax.random.normal(keys[7], (P_DIM, VIS_DIM), f32) * 0.02,
        'patch_b': jax.random.normal(keys[8], (VIS_DIM,), f32) * 0.02,
        'pos_emb': jax.random.normal(keys[9], (V_TOK, VIS_DIM), f32) * 0.02,
        'latents': jax.random.normal(keys[10], (PERC_N, VIS_DIM), f32),
    }

    vision_x = jax.random.normal(keys[11], (B, S, C, H, W, D), f32)
    text_input = jax.random.randint(keys[12], (B, T_TEXT), 0, V_TOTAL, dtype=jnp.int32)

    fwd = jax.jit(my_embedding_forward)
    out_put, cls_logits = fwd(params, vision_x, text_input)
    jax.block_until_ready((out_put, cls_logits))

    # ---- correctness check against a pure-JAX reference of the same forward ----
    out_ref, cls_ref = forward_reference(params, vision_x, text_input)
    assert out_put.shape == (B, T_TEXT, EMB_DIM)
    assert cls_logits.shape == (B * S, 2, N_GROUPS)
    assert jnp.allclose(out_put, out_ref, atol=2e-2, rtol=2e-2)
    assert jnp.allclose(cls_logits, cls_ref, atol=2e-2, rtol=2e-2)

    print("KERNEL_OK")
</pallas_src>

<mosaic_0001>
module attributes {stable_mosaic.version = 11 : i64} {
  func.func @_vision_fused_kernel(%arg0: i32, %arg1: memref<1x8x1024xbf16, #tpu.memory_space<vmem>>, %arg2: memref<1024x128xbf16, #tpu.memory_space<vmem>>, %arg3: memref<1x128xf32, #tpu.memory_space<vmem>>, %arg4: memref<8x128xf32, #tpu.memory_space<vmem>>, %arg5: memref<14x8xf32, #tpu.memory_space<vmem>>, %arg6: memref<128x128xbf16, #tpu.memory_space<vmem>>, %arg7: memref<1x128xf32, #tpu.memory_space<vmem>>, %arg8: memref<4x128xbf16, #tpu.memory_space<vmem>>, %arg9: memref<128x128xbf16, #tpu.memory_space<vmem>>, %arg10: memref<1x128xf32, #tpu.memory_space<vmem>>, %arg11: memref<1x4x128xf32, #tpu.memory_space<vmem>>, %arg12: memref<1x1x128xf32, #tpu.memory_space<vmem>>) attributes {dimension_semantics = [#tpu.dimension_semantics<parallel>], iteration_bounds = array<i64: 2>, scalar_prefetch = 0 : i64, scratch_operands = 0 : i64, tpu.core_type = #tpu.core_type<tc>, window_params = [{transform_indices = @transform_0, window_bounds = array<i64: 1, 8, 1024>}, {pipeline_mode = #tpu.pipeline_mode<synchronous>, transform_indices = @transform_1, window_bounds = array<i64: 1024, 128>}, {pipeline_mode = #tpu.pipeline_mode<synchronous>, transform_indices = @transform_2, window_bounds = array<i64: 1, 128>}, {pipeline_mode = #tpu.pipeline_mode<synchronous>, transform_indices = @transform_3, window_bounds = array<i64: 8, 128>}, {pipeline_mode = #tpu.pipeline_mode<synchronous>, transform_indices = @transform_4, window_bounds = array<i64: 14, 8>}, {pipeline_mode = #tpu.pipeline_mode<synchronous>, transform_indices = @transform_5, window_bounds = array<i64: 128, 128>}, {pipeline_mode = #tpu.pipeline_mode<synchronous>, transform_indices = @transform_6, window_bounds = array<i64: 1, 128>}, {pipeline_mode = #tpu.pipeline_mode<synchronous>, transform_indices = @transform_7, window_bounds = array<i64: 4, 128>}, {pipeline_mode = #tpu.pipeline_mode<synchronous>, transform_indices = @transform_8, window_bounds = array<i64: 128, 128>}, {pipeline_mode = #tpu.pipeline_mode<synchronous>, transform_indices = @transform_9, window_bounds = array<i64: 1, 128>}, {transform_indices = @transform_10, window_bounds = array<i64: 1, 4, 128>}, {transform_indices = @transform_11, window_bounds = array<i64: 1, 1, 128>}]} {
    %c0 = arith.constant 0 : index
    %c0_0 = arith.constant 0 : index
    %c0_1 = arith.constant 0 : index
    %0 = vector.load %arg1[%c0, %c0_0, %c0_1] : memref<1x8x1024xbf16, #tpu.memory_space<vmem>>, vector<1x8x1024xbf16>
    %1 = vector.shape_cast %0 : vector<1x8x1024xbf16> to vector<8x1024xbf16>
    %c0_2 = arith.constant 0 : index
    %c0_3 = arith.constant 0 : index
    %2 = vector.load %arg2[%c0_2, %c0_3] : memref<1024x128xbf16, #tpu.memory_space<vmem>>, vector<1024x128xbf16>
    %cst = arith.constant dense<0.000000e+00> : vector<8x128xf32>
    %3 = tpu.matmul %1, %2, %cst {dimension_numbers = #tpu.dot_dimension_numbers<[1], [0], [0], [1], [0, 0, 1, 1], [], []>} : vector<8x1024xbf16>, vector<1024x128xbf16>, vector<8x128xf32> -> vector<8x128xf32>
    %c0_4 = arith.constant 0 : index
    %c0_5 = arith.constant 0 : index
    %4 = vector.load %arg3[%c0_4, %c0_5] : memref<1x128xf32, #tpu.memory_space<vmem>>, vector<1x128xf32>
    %5 = vector.broadcast %4 : vector<1x128xf32> to vector<8x128xf32>
    %6 = arith.addf %3, %5 : vector<8x128xf32>
    %c0_6 = arith.constant 0 : index
    %c0_7 = arith.constant 0 : index
    %7 = vector.load %arg4[%c0_6, %c0_7] : memref<8x128xf32, #tpu.memory_space<vmem>>, vector<8x128xf32>
    %8 = arith.addf %6, %7 : vector<8x128xf32>
    %9 = arith.truncf %8 : vector<8x128xf32> to vector<8x128xbf16>
    %c0_8 = arith.constant 0 : index
    %c0_9 = arith.constant 0 : index
    %10 = vector.load %arg5[%c0_8, %c0_9] : memref<14x8xf32, #tpu.memory_space<vmem>>, vector<14x8xf32>
    %cst_10 = arith.constant dense<0xFF800000> : vector<14xf32>
    %11 = vector.multi_reduction <maximumf>, %10, %cst_10 [1] : vector<14x8xf32> to vector<14xf32>
    %12 = vector.shape_cast %11 : vector<14xf32> to vector<14x1xf32>
    %13 = vector.broadcast %12 : vector<14x1xf32> to vector<14x8xf32>
    %14 = arith.subf %10, %13 : vector<14x8xf32>
    %15 = math.exp %14 : vector<14x8xf32>
    %cst_11 = arith.constant dense<0.000000e+00> : vector<14xf32>
    %16 = vector.multi_reduction <add>, %15, %cst_11 [1] : vector<14x8xf32> to vector<14xf32>
    %17 = vector.shape_cast %16 : vector<14xf32> to vector<14x1xf32>
    %18 = vector.broadcast %17 : vector<14x1xf32> to vector<14x8xf32>
    %19 = arith.divf %15, %18 : vector<14x8xf32>
    %20 = arith.truncf %19 : vector<14x8xf32> to vector<14x8xbf16>
    %cst_12 = arith.constant dense<0.000000e+00> : vector<14x128xf32>
    %21 = tpu.matmul %20, %9, %cst_12 {dimension_numbers = #tpu.dot_dimension_numbers<[1], [0], [0], [1], [0, 0, 1, 1], [], []>} : vector<14x8xbf16>, vector<8x128xbf16>, vector<14x128xf32> -> vector<14x128xf32>
    %22 = arith.truncf %21 : vector<14x128xf32> to vector<14x128xbf16>
    %c0_13 = arith.constant 0 : index
    %c0_14 = arith.constant 0 : index
    %23 = vector.load %arg6[%c0_13, %c0_14] : memref<128x128xbf16, #tpu.memory_space<vmem>>, vector<128x128xbf16>
    %cst_15 = arith.constant dense<0.000000e+00> : vector<14x128xf32>
    %24 = tpu.matmul %22, %23, %cst_15 {dimension_numbers = #tpu.dot_dimension_numbers<[1], [0], [0], [1], [0, 0, 1, 1], [], []>} : vector<14x128xbf16>, vector<128x128xbf16>, vector<14x128xf32> -> vector<14x128xf32>
    %25 = tpu.iota {dimensions = array<i32: 0>} : vector<14x128xi32>
    %26 = tpu.iota {dimensions = array<i32: 1>} : vector<14x128xi32>
    %27 = arith.cmpi eq, %26, %25 : vector<14x128xi32>
    %c14_i32 = arith.constant 14 : i32
    %28 = vector.broadcast %c14_i32 : i32 to vector<14x128xi32>
    %29 = arith.addi %25, %28 : vector<14x128xi32>
    %30 = arith.cmpi eq, %26, %29 : vector<14x128xi32>
    %31 = arith.ori %27, %30 : vector<14x128xi1>
    %32 = arith.extui %31 : vector<14x128xi1> to vector<14x128xi32>
    %33 = arith.sitofp %32 : vector<14x128xi32> to vector<14x128xf32>
    %34 = arith.mulf %24, %33 : vector<14x128xf32>
    %cst_16 = arith.constant dense<0.000000e+00> : vector<128xf32>
    %35 = vector.multi_reduction <add>, %34, %cst_16 [0] : vector<14x128xf32> to vector<128xf32>
    %36 = vector.shape_cast %35 : vector<128xf32> to vector<1x128xf32>
    %c0_17 = arith.constant 0 : index
    %c0_18 = arith.constant 0 : index
    %37 = vector.load %arg7[%c0_17, %c0_18] : memref<1x128xf32, #tpu.memory_space<vmem>>, vector<1x128xf32>
    %38 = arith.addf %36, %37 : vector<1x128xf32>
    %c0_19 = arith.constant 0 : index
    %c0_20 = arith.constant 0 : index
    %c0_21 = arith.constant 0 : index
    %39 = vector.load %arg12[%c0_19, %c0_20, %c0_21] : memref<1x1x128xf32, #tpu.memory_space<vmem>>, vector<1x1x128xf32>
    %40 = vector.shape_cast %39 : vector<1x1x128xf32> to vector<1x128xf32>
    %41 = vector.shape_cast %38 : vector<1x128xf32> to vector<1x1x128xf32>
    tpu.vector_store %arg12[%c0_19, %c0_20, %c0_21], %41 {strides = array<i32>} : memref<1x1x128xf32, #tpu.memory_space<vmem>>, vector<1x1x128xf32>,
    %c0_22 = arith.constant 0 : index
    %c0_23 = arith.constant 0 : index
    %42 = vector.load %arg8[%c0_22, %c0_23] : memref<4x128xbf16, #tpu.memory_space<vmem>>, vector<4x128xbf16>
    %cst_24 = arith.constant dense<0.000000e+00> : vector<4x8xf32>
    %43 = tpu.matmul %42, %9, %cst_24 {dimension_numbers = #tpu.dot_dimension_numbers<[1], [1], [0], [0], [0, 0, 1, 0], [], []>} : vector<4x128xbf16>, vector<8x128xbf16>, vector<4x8xf32> -> vector<4x8xf32>
    %cst_25 = arith.constant 0.0883883461 : f32
    %44 = vector.broadcast %cst_25 : f32 to vector<4x8xf32>
    %45 = arith.mulf %43, %44 : vector<4x8xf32>
    %cst_26 = arith.constant dense<0xFF800000> : vector<4xf32>
    %46 = vector.multi_reduction <maximumf>, %45, %cst_26 [1] : vector<4x8xf32> to vector<4xf32>
    %47 = vector.shape_cast %46 : vector<4xf32> to vector<4x1xf32>
    %48 = vector.broadcast %47 : vector<4x1xf32> to vector<4x8xf32>
    %49 = arith.subf %45, %48 : vector<4x8xf32>
    %50 = math.exp %49 : vector<4x8xf32>
    %cst_27 = arith.constant dense<0.000000e+00> : vector<4xf32>
    %51 = vector.multi_reduction <add>, %50, %cst_27 [1] : vector<4x8xf32> to vector<4xf32>
    %52 = vector.shape_cast %51 : vector<4xf32> to vector<4x1xf32>
    %53 = vector.broadcast %52 : vector<4x1xf32> to vector<4x8xf32>
    %54 = arith.divf %50, %53 : vector<4x8xf32>
    %55 = arith.truncf %54 : vector<4x8xf32> to vector<4x8xbf16>
    %cst_28 = arith.constant dense<0.000000e+00> : vector<4x128xf32>
    %56 = tpu.matmul %55, %9, %cst_28 {dimension_numbers = #tpu.dot_dimension_numbers<[1], [0], [0], [1], [0, 0, 1, 1], [], []>} : vector<4x8xbf16>, vector<8x128xbf16>, vector<4x128xf32> -> vector<4x128xf32>
    %57 = arith.truncf %56 : vector<4x128xf32> to vector<4x128xbf16>
    %c0_29 = arith.constant 0 : index
    %c0_30 = arith.constant 0 : index
    %58 = vector.load %arg9[%c0_29, %c0_30] : memref<128x128xbf16, #tpu.memory_space<vmem>>, vector<128x128xbf16>
    %cst_31 = arith.constant dense<0.000000e+00> : vector<4x128xf32>
    %59 = tpu.matmul %57, %58, %cst_31 {dimension_numbers = #tpu.dot_dimension_numbers<[1], [0], [0], [1], [0, 0, 1, 1], [], []>} : vector<4x128xbf16>, vector<128x128xbf16>, vector<4x128xf32> -> vector<4x128xf32>
    %c0_32 = arith.constant 0 : index
    %c0_33 = arith.constant 0 : index
    %60 = vector.load %arg10[%c0_32, %c0_33] : memref<1x128xf32, #tpu.memory_space<vmem>>, vector<1x128xf32>
    %61 = vector.broadcast %60 : vector<1x128xf32> to vector<4x128xf32>
    %62 = arith.addf %59, %61 : vector<4x128xf32>
    %c0_34 = arith.constant 0 : index
    %c0_35 = arith.constant 0 : index
    %c0_36 = arith.constant 0 : index
    %63 = vector.load %arg11[%c0_34, %c0_35, %c0_36] : memref<1x4x128xf32, #tpu.memory_space<vmem>>, vector<1x4x128xf32>
    %64 = vector.shape_cast %63 : vector<1x4x128xf32> to vector<4x128xf32>
    %65 = vector.shape_cast %62 : vector<4x128xf32> to vector<1x4x128xf32>
    tpu.vector_store %arg11[%c0_34, %c0_35, %c0_36], %65 {strides = array<i32>} : memref<1x4x128xf32, #tpu.memory_space<vmem>>, vector<1x4x128xf32>,
    return
  }
  func.func @transform_0(%arg0: i32) -> (i32, i32, i32) {
    %c0_i32 = arith.constant 0 : i32
    %c0_i32_0 = arith.constant 0 : i32
    %c0_i32_1 = arith.constant 0 : i32
    return %arg0, %c0_i32, %c0_i32_0 : i32, i32, i32
  }
  func.func @transform_1(%arg0: i32) -> (i32, i32) {
    %c0_i32 = arith.constant 0 : i32
    %c0_i32_0 = arith.constant 0 : i32
    %c0_i32_1 = arith.constant 0 : i32
    return %c0_i32, %c0_i32_0 : i32, i32
  }
  func.func @transform_2(%arg0: i32) -> (i32, i32) {
    %c0_i32 = arith.constant 0 : i32
    %c0_i32_0 = arith.constant 0 : i32
    %c0_i32_1 = arith.constant 0 : i32
    return %c0_i32, %c0_i32_0 : i32, i32
  }
  func.func @transform_3(%arg0: i32) -> (i32, i32) {
    %c0_i32 = arith.constant 0 : i32
    %c0_i32_0 = arith.constant 0 : i32
    %c0_i32_1 = arith.constant 0 : i32
    return %c0_i32, %c0_i32_0 : i32, i32
  }
  func.func @transform_4(%arg0: i32) -> (i32, i32) {
    %c0_i32 = arith.constant 0 : i32
    %c0_i32_0 = arith.constant 0 : i32
    %c0_i32_1 = arith.constant 0 : i32
    return %c0_i32, %c0_i32_0 : i32, i32
  }
  func.func @transform_5(%arg0: i32) -> (i32, i32) {
    %c0_i32 = arith.constant 0 : i32
    %c0_i32_0 = arith.constant 0 : i32
    %c0_i32_1 = arith.constant 0 : i32
    return %c0_i32, %c0_i32_0 : i32, i32
  }
  func.func @transform_6(%arg0: i32) -> (i32, i32) {
    %c0_i32 = arith.constant 0 : i32
    %c0_i32_0 = arith.constant 0 : i32
    %c0_i32_1 = arith.constant 0 : i32
    return %c0_i32, %c0_i32_0 : i32, i32
  }
  func.func @transform_7(%arg0: i32) -> (i32, i32) {
    %c0_i32 = arith.constant 0 : i32
    %c0_i32_0 = arith.constant 0 : i32
    %c0_i32_1 = arith.constant 0 : i32
    return %c0_i32, %c0_i32_0 : i32, i32
  }
  func.func @transform_8(%arg0: i32) -> (i32, i32) {
    %c0_i32 = arith.constant 0 : i32
    %c0_i32_0 = arith.constant 0 : i32
    %c0_i32_1 = arith.constant 0 : i32
    return %c0_i32, %c0_i32_0 : i32, i32
  }
  func.func @transform_9(%arg0: i32) -> (i32, i32) {
    %c0_i32 = arith.constant 0 : i32
    %c0_i32_0 = arith.constant 0 : i32
    %c0_i32_1 = arith.constant 0 : i32
    return %c0_i32, %c0_i32_0 : i32, i32
  }
  func.func @transform_10(%arg0: i32) -> (i32, i32, i32) {
    %c0_i32 = arith.constant 0 : i32
    %c0_i32_0 = arith.constant 0 : i32
    %c0_i32_1 = arith.constant 0 : i32
    return %arg0, %c0_i32, %c0_i32_0 : i32, i32, i32
  }
  func.func @transform_11(%arg0: i32) -> (i32, i32, i32) {
    %c0_i32 = arith.constant 0 : i32
    %c0_i32_0 = arith.constant 0 : i32
    %c0_i32_1 = arith.constant 0 : i32
    return %arg0, %c0_i32, %c0_i32_0 : i32, i32, i32
  }
}

module attributes {stable_mosaic.version = 11 : i64} {
  func.func @_embed_gather_kernel(%arg0: i32, %arg1: memref<16xi32, #tpu.memory_space<smem>>, %arg2: memref<266x128xf32, #tpu.memory_space<vmem>>, %arg3: memref<1x8x128xf32, #tpu.memory_space<vmem>>) attributes {dimension_semantics = [#tpu.dimension_semantics<parallel>], iteration_bounds = array<i64: 2>, scalar_prefetch = 1 : i64, scratch_operands = 0 : i64, tpu.core_type = #tpu.core_type<tc>, window_params = [{pipeline_mode = #tpu.pipeline_mode<synchronous>, transform_indices = @transform_0, window_bounds = array<i64: 266, 128>}, {transform_indices = @transform_1, window_bounds = array<i64: 1, 8, 128>}]} {
    %c8_i32 = arith.constant 8 : i32
    %0 = arith.muli %arg0, %c8_i32 : i32
    %c0_i32 = arith.constant 0 : i32
    %1 = arith.addi %0, %c0_i32 : i32
    %2 = arith.index_cast %1 : i32 to index
    %3 = memref.load %arg1[%2] : memref<16xi32, #tpu.memory_space<smem>>
    %4 = arith.index_cast %3 : i32 to index
    %c0 = arith.constant 0 : index
    %5 = vector.load %arg2[%4, %c0] : memref<266x128xf32, #tpu.memory_space<vmem>>, vector<1x128xf32>
    %c8_i32_0 = arith.constant 8 : i32
    %6 = arith.muli %arg0, %c8_i32_0 : i32
    %c1_i32 = arith.constant 1 : i32
    %7 = arith.addi %6, %c1_i32 : i32
    %8 = arith.index_cast %7 : i32 to index
    %9 = memref.load %arg1[%8] : memref<16xi32, #tpu.memory_space<smem>>
    %10 = arith.index_cast %9 : i32 to index
    %c0_1 = arith.constant 0 : index
    %11 = vector.load %arg2[%10, %c0_1] : memref<266x128xf32, #tpu.memory_space<vmem>>, vector<1x128xf32>
    %c8_i32_2 = arith.constant 8 : i32
    %12 = arith.muli %arg0, %c8_i32_2 : i32
    %c2_i32 = arith.constant 2 : i32
    %13 = arith.addi %12, %c2_i32 : i32
    %14 = arith.index_cast %13 : i32 to index
    %15 = memref.load %arg1[%14] : memref<16xi32, #tpu.memory_space<smem>>
    %16 = arith.index_cast %15 : i32 to index
    %c0_3 = arith.constant 0 : index
    %17 = vector.load %arg2[%16, %c0_3] : memref<266x128xf32, #tpu.memory_space<vmem>>, vector<1x128xf32>
    %c8_i32_4 = arith.constant 8 : i32
    %18 = arith.muli %arg0, %c8_i32_4 : i32
    %c3_i32 = arith.constant 3 : i32
    %19 = arith.addi %18, %c3_i32 : i32
    %20 = arith.index_cast %19 : i32 to index
    %21 = memref.load %arg1[%20] : memref<16xi32, #tpu.memory_space<smem>>
    %22 = arith.index_cast %21 : i32 to index
    %c0_5 = arith.constant 0 : index
    %23 = vector.load %arg2[%22, %c0_5] : memref<266x128xf32, #tpu.memory_space<vmem>>, vector<1x128xf32>
    %c8_i32_6 = arith.constant 8 : i32
    %24 = arith.muli %arg0, %c8_i32_6 : i32
    %c4_i32 = arith.constant 4 : i32
    %25 = arith.addi %24, %c4_i32 : i32
    %26 = arith.index_cast %25 : i32 to index
    %27 = memref.load %arg1[%26] : memref<16xi32, #tpu.memory_space<smem>>
    %28 = arith.index_cast %27 : i32 to index
    %c0_7 = arith.constant 0 : index
    %29 = vector.load %arg2[%28, %c0_7] : memref<266x128xf32, #tpu.memory_space<vmem>>, vector<1x128xf32>
    %c8_i32_8 = arith.constant 8 : i32
    %30 = arith.muli %arg0, %c8_i32_8 : i32
    %c5_i32 = arith.constant 5 : i32
    %31 = arith.addi %30, %c5_i32 : i32
    %32 = arith.index_cast %31 : i32 to index
    %33 = memref.load %arg1[%32] : memref<16xi32, #tpu.memory_space<smem>>
    %34 = arith.index_cast %33 : i32 to index
    %c0_9 = arith.constant 0 : index
    %35 = vector.load %arg2[%34, %c0_9] : memref<266x128xf32, #tpu.memory_space<vmem>>, vector<1x128xf32>
    %c8_i32_10 = arith.constant 8 : i32
    %36 = arith.muli %arg0, %c8_i32_10 : i32
    %c6_i32 = arith.constant 6 : i32
    %37 = arith.addi %36, %c6_i32 : i32
    %38 = arith.index_cast %37 : i32 to index
    %39 = memref.load %arg1[%38] : memref<16xi32, #tpu.memory_space<smem>>
    %40 = arith.index_cast %39 : i32 to index
    %c0_11 = arith.constant 0 : index
    %41 = vector.load %arg2[%40, %c0_11] : memref<266x128xf32, #tpu.memory_space<vmem>>, vector<1x128xf32>
    %c8_i32_12 = arith.constant 8 : i32
    %42 = arith.muli %arg0, %c8_i32_12 : i32
    %c7_i32 = arith.constant 7 : i32
    %43 = arith.addi %42, %c7_i32 : i32
    %44 = arith.index_cast %43 : i32 to index
    %45 = memref.load %arg1[%44] : memref<16xi32, #tpu.memory_space<smem>>
    %46 = arith.index_cast %45 : i32 to index
    %c0_13 = arith.constant 0 : index
    %47 = vector.load %arg2[%46, %c0_13] : memref<266x128xf32, #tpu.memory_space<vmem>>, vector<1x128xf32>
    %48 = tpu.concatenate %5, %11, %17, %23, %29, %35, %41, %47 in 0 : vector<1x128xf32>, vector<1x128xf32>, vector<1x128xf32>, vector<1x128xf32>, vector<1x128xf32>, vector<1x128xf32>, vector<1x128xf32>, vector<1x128xf32> -> vector<8x128xf32>
    %c0_14 = arith.constant 0 : index
    %c0_15 = arith.constant 0 : index
    %c0_16 = arith.constant 0 : index
    %49 = vector.load %arg3[%c0_14, %c0_15, %c0_16] : memref<1x8x128xf32, #tpu.memory_space<vmem>>, vector<1x8x128xf32>
    %50 = vector.shape_cast %49 : vector<1x8x128xf32> to vector<8x128xf32>
    %51 = vector.shape_cast %48 : vector<8x128xf32> to vector<1x8x128xf32>
    tpu.vector_store %arg3[%c0_14, %c0_15, %c0_16], %51 {strides = array<i32>} : memref<1x8x128xf32, #tpu.memory_space<vmem>>, vector<1x8x128xf32>,
    return
  }
  func.func @transform_0(%arg0: i32, %arg1: memref<16xi32, #tpu.memory_space<smem>>) -> (i32, i32) {
    %c0_i32 = arith.constant 0 : i32
    %c0_i32_0 = arith.constant 0 : i32
    %c0_i32_1 = arith.constant 0 : i32
    return %c0_i32, %c0_i32_0 : i32, i32
  }
  func.func @transform_1(%arg0: i32, %arg1: memref<16xi32, #tpu.memory_space<smem>>) -> (i32, i32, i32) {
    %c0_i32 = arith.constant 0 : i32
    %c0_i32_0 = arith.constant 0 : i32
    %c0_i32_1 = arith.constant 0 : i32
    return %arg0, %c0_i32, %c0_i32_0 : i32, i32, i32
  }
}

</mosaic_0001>

<bundles_post_ra>
// kernel: my_embedding_forward.2
= control target key start
LH: loop header
LB: loop body
LE: loop exit
PB: predicated region body
PF: predicated region fallthrough
CT: control target
= control target key end

     0   :  { %s2065_s17 = smov 0   ;;  %s2400_s0 = inlined_call_operand.vmem [shape: bf16[2,8,1024], index: 0, kind: input, shape index: {}]   ;;  %s2401_s1 = inlined_call_operand.vmem [shape: bf16[1024,128], index: 1, kind: input, shape index: {}]   ;;  %s2402_s2 = inlined_call_operand.vmem [shape: f32[1,128], index: 2, kind: input, shape index: {}]   ;;  %s2403_s3 = inlined_call_operand.vmem [shape: f32[8,128], index: 3, kind: input, shape index: {}]   ;;  %s2404_s4 = inlined_call_operand.vmem [shape: f32[14,8], index: 4, kind: input, shape index: {}]   ;;  %s2405_s5 = inlined_call_operand.vmem [shape: bf16[128,128], index: 5, kind: input, shape index: {}]   ;;  %s2406_s6 = inlined_call_operand.vmem [shape: f32[1,128], index: 6, kind: input, shape index: {}]   ;;  %s2407_s7 = inlined_call_operand.vmem [shape: bf16[4,128], index: 7, kind: input, shape index: {}]   ;;  %s2408_s8 = inlined_call_operand.vmem [shape: bf16[128,128], index: 8, kind: input, shape index: {}]   ;;  %s2409_s9 = inlined_call_operand.vmem [shape: f32[1,128], index: 9, kind: input, shape index: {}]   ;;  %s2410_s10 = inlined_call_operand.vmem [shape: f32[2,4,128], index: 10, kind: output, shape index: {0}]   ;;  %s2411_s11 = inlined_call_operand.vmem [shape: f32[2,1,128], index: 11, kind: output, shape index: {1}]  }
   0x1 LB: > { %s1610_s18 = sadd.s32 4294967295, %s2001_s17   ;;  %p1614_p0 = scmp.ge.s32.totalorder %s2001_s17, 1  ;;  %s2001_s17 = sphi %s2065_s17, %s22_s17  }
   0x2   : > { %p340_p1 = scmp.lt.s32.totalorder %s2001_s17, 3 }
   0x4   : > { %p341_p2 = pnand %p1614_p0, %p340_p1 }
   0x5   : > { %v1895_v0 = vld [vmem:[%s2401_s1 + $0x40] sm:$0xff] (!%p341_p2)   ;;  %v1899_v4 = vld [vmem:[%s2401_s1 + $0x48] sm:$0xff] (!%p341_p2)   ;;  %v1903_v8 = vld [vmem:[%s2401_s1 + $0x50] sm:$0xff] (!%p341_p2)   ;;  %p382_p3 = scmp.lt.s32.totalorder (!%p341_p2), %s1610_s18, 1  ;;  %vm2004_vm0 = vmmov (!%p341_p2), 0   ;;  %vm1111_vm1 = vcmask (!%p341_p2), 64512  }
   0x6   : > { %344 = sbr.rel (%p341_p2) target bundleno = 1260 (0x4ec), region = 60  ;;  %v1896_v1 = vld [vmem:[%s2401_s1 + $0xc0] sm:$0xff] (!%p341_p2)   ;;  %1715 = vmatprep.subr.bf16.mxu0 (!%p341_p2), %v1895_v0  ;;  %v1900_v5 = vld [vmem:[%s2401_s1 + $0xc8] sm:$0xff] (!%p341_p2)   ;;  %v1904_v9 = vld [vmem:[%s2401_s1 + $0xd0] sm:$0xff] (!%p341_p2)   ;;  %vm1115_vm2 = vcmask (!%p341_p2), 62464   ;;  %vm1139_vm3 = vcmask (!%p341_p2), 1043456  }
   0x7   : > { %v1897_v2 = vld [vmem:[%s2401_s1] sm:$0xff] (!%p341_p2)   ;;  %1737 = vmatprep.subr.bf16.mxu1 (!%p341_p2), %v1896_v1  ;;  %v1901_v6 = vld [vmem:[%s2401_s1 + $0x8] sm:$0xff] (!%p341_p2)   ;;  %v1905_v10 = vld [vmem:[%s2401_s1 + $0x10] sm:$0xff] (!%p341_p2)   ;;  %vm1363_vm4 = vcmask (!%p341_p2), 60416   ;;  %vm1309_vm11 = vcmask (!%p341_p2), 1045504  }
   0x8   : > { %v1898_v3 = vld [vmem:[%s2401_s1 + $0x80] sm:$0xff] (!%p341_p2)   ;;  %1716 = vmatpush3.bf16.msra.mxu0 (!%p341_p2), %v1897_v2  ;;  %v1902_v7 = vld [vmem:[%s2401_s1 + $0x88] sm:$0xff] (!%p341_p2)   ;;  %v1906_v11 = vld [vmem:[%s2401_s1 + $0x90] sm:$0xff] (!%p341_p2)  }
   0x9   : > { %1738 = vmatpush3.bf16.msra.mxu1 (!%p341_p2), %v1898_v3  ;;  %1717 = vmatprep.subr.bf16.mxu0 (!%p341_p2), %v1899_v4  ;;  %v1907_v12 = vld [vmem:[%s2401_s1 + $0x58] sm:$0xff] (!%p341_p2)   ;;  %v1911_v16 = vld [vmem:[%s2401_s1 + $0x60] sm:$0xff] (!%p341_p2)   ;;  %v1915_v20 = vld [vmem:[%s2401_s1 + $0x68] sm:$0xff] (!%p341_p2)  }
   0xa   : > { %1739 = vmatprep.subr.bf16.mxu1 (!%p341_p2), %v1900_v5  ;;  %v1908_v13 = vld [vmem:[%s2401_s1 + $0xd8] sm:$0xff] (!%p341_p2)   ;;  %v1912_v17 = vld [vmem:[%s2401_s1 + $0xe0] sm:$0xff] (!%p341_p2)   ;;  %v1916_v21 = vld [vmem:[%s2401_s1 + $0xe8] sm:$0xff] (!%p341_p2)  }
   0xb   : > { %v1909_v14 = vld [vmem:[%s2401_s1 + $0x18] sm:$0xff] (!%p341_p2)   ;;  %v1913_v18 = vld [vmem:[%s2401_s1 + $0x20] sm:$0xff] (!%p341_p2)   ;;  %v1917_v22 = vld [vmem:[%s2401_s1 + $0x28] sm:$0xff] (!%p341_p2)  }
   0xc   : > { %1718 = vmatpush3.bf16.msra.mxu0 (!%p341_p2), %v1901_v6  ;;  %v1910_v15 = vld [vmem:[%s2401_s1 + $0x98] sm:$0xff] (!%p341_p2)   ;;  %v1914_v19 = vld [vmem:[%s2401_s1 + $0xa0] sm:$0xff] (!%p341_p2)   ;;  %v1918_v23 = vld [vmem:[%s2401_s1 + $0xa8] sm:$0xff] (!%p341_p2)  }
   0xd   : > { %1740 = vmatpush3.bf16.msra.mxu1 %v1902_v7  ;;  %1719 = vmatprep.subr.bf16.mxu0 %v1903_v8  ;;  %s2413_s18 = smov (!%p382_p3, %s1610_s18), 1  ;;  %v1919_v24 = vld [vmem:[%s2401_s1 + $0x70] sm:$0xff]   ;;  %v1923_v28 = vld [vmem:[%s2401_s1 + $0x78] sm:$0xff]   ;;  %v1931_v38 = vld [vmem:[%s2401_s1 + $0x140] sm:$0xff]  }
   0xe   : > { %1741 = vmatprep.subr.bf16.mxu1 %v1904_v9  ;;  %v1920_v25 = vld [vmem:[%s2401_s1 + $0xf0] sm:$0xff]   ;;  %s1714_s22 = sshll.u32 %s2413_s18, 5  ;;  %v1924_v29 = vld [vmem:[%s2401_s1 + $0xf8] sm:$0xff]   ;;  %v1932_v39 = vld [vmem:[%s2401_s1 + $0x1c0] sm:$0xff]   ;;  %s393_s30 = scalar_lea.vmem %s2411_s11, %s2413_s18 }
   0xf   : > { %v1921_v26 = vld [vmem:[%s2401_s1 + $0x30] sm:$0xff]   ;;  %s2173_s12 = scalar_lea.vmem %s2400_s0, %s1714_s22  ;;  %v1925_v30 = vld [vmem:[%s2401_s1 + $0x38] sm:$0xff]   ;;  %v1933_v40 = vld [vmem:[%s2401_s1 + $0x100] sm:$0xff]   ;;  %s1617_s13 = sshll.u32 %s2413_s18, 2 }
  0x10   : > { %1720 = vmatpush3.bf16.msra.mxu0 %v1905_v10  ;;  %v1922_v27 = vld [vmem:[%s2401_s1 + $0xb0] sm:$0xff]   ;;  %v1926_v31 = vld [vmem:[%s2401_s1 + $0xb8] sm:$0xff]   ;;  %v395_v32 = vld [vmem:[%s2173_s12] sm:$0xff]  ;;  %s390_s19 = scalar_lea.vmem %s2410_s10, %s1617_s13 }
  0x11   : > { %1742 = vmatpush3.bf16.msra.mxu1 %v1906_v11  ;;  %1721 = vmatprep.subr.bf16.mxu0 %v1907_v12  ;;  %v396_v33 = vld [vmem:[%s2173_s12 + $0x8] sm:$0xff]  ;;  %v1619_v34 = vcombine.low %v395_v32, %v395_v32  ;;  %v1620_v35 = vcombine.high %v395_v32, %v395_v32  ;;  %v1934_v41 = vld [vmem:[%s2401_s1 + $0x180] sm:$0xff]   ;;  %v1939_v46 = vld [vmem:[%s2401_s1 + $0x150] sm:$0xff]   ;;  %v2003_v12 = vmov 0.0  }
  0x12   : > { %1743 = vmatprep.subr.bf16.mxu1 %v1908_v13  ;;  %v1621_v36 = vcombine.low %v396_v33, %v396_v33  ;;  %v1622_v37 = vcombine.high %v396_v33, %v396_v33  ;;  %v1935_v42 = vld [vmem:[%s2401_s1 + $0x148] sm:$0xff]   ;;  %v1940_v47 = vld [vmem:[%s2401_s1 + $0x1d0] sm:$0xff]   ;;  %v1943_v50 = vld [vmem:[%s2401_s1 + $0x158] sm:$0xff]  }
  0x13   : > { %978 = vmatprep.mubr.bf16.mxu0 %v1620_v35  ;;  %v1936_v43 = vld [vmem:[%s2401_s1 + $0x1c8] sm:$0xff]   ;;  %v1941_v48 = vld [vmem:[%s2401_s1 + $0x110] sm:$0xff]   ;;  %v1944_v51 = vld [vmem:[%s2401_s1 + $0x1d8] sm:$0xff]  }
  0x14   : > { %1722 = vmatpush3.bf16.msra.mxu0 %v1909_v14  ;;  %1018 = vmatprep.mubr.bf16.mxu1 %v1622_v37  ;;  %v1937_v44 = vld [vmem:[%s2401_s1 + $0x108] sm:$0xff]   ;;  %v1942_v49 = vld [vmem:[%s2401_s1 + $0x190] sm:$0xff]   ;;  %v1945_v52 = vld [vmem:[%s2401_s1 + $0x118] sm:$0xff]  }
  0x15   : > { %1744 = vmatpush3.bf16.msra.mxu1 %v1910_v15  ;;  %1723 = vmatprep.subr.bf16.mxu0 %v1911_v16  ;;  %v1938_v45 = vld [vmem:[%s2401_s1 + $0x188] sm:$0xff]   ;;  %v1946_v53 = vld [vmem:[%s2401_s1 + $0x198] sm:$0xff]   ;;  %v1947_v54 = vld [vmem:[%s2401_s1 + $0x160] sm:$0xff]  }
  0x16   : > { %1745 = vmatprep.subr.bf16.mxu1 %v1912_v17  ;;  %v1948_v55 = vld [vmem:[%s2401_s1 + $0x1e0] sm:$0xff]   ;;  %v1951_v58 = vld [vmem:[%s2401_s1 + $0x168] sm:$0xff]   ;;  %v1955_v62 = vld [vmem:[%s2401_s1 + $0x170] sm:$0xff]  }
  0x17   : > { %v1949_v56 = vld [vmem:[%s2401_s1 + $0x120] sm:$0xff]   ;;  %v1952_v59 = vld [vmem:[%s2401_s1 + $0x1e8] sm:$0xff]   ;;  %v1956_v63 = vld [vmem:[%s2401_s1 + $0x1f0] sm:$0xff]  }
  0x18   : > { %1724 = vmatpush3.bf16.msra.mxu0 %v1913_v18  ;;  %v1950_v57 = vld [vmem:[%s2401_s1 + $0x1a0] sm:$0xff]   ;;  %v1953_v60 = vld [vmem:[%s2401_s1 + $0x128] sm:$0xff]   ;;  %v1957_v0 = vld [vmem:[%s2401_s1 + $0x130] sm:$0xff]  }
  0x19   : > { %1746 = vmatpush3.bf16.msra.mxu1 %v1914_v19  ;;  %1725 = vmatprep.subr.bf16.mxu0 %v1915_v20  ;;  %v1954_v61 = vld [vmem:[%s2401_s1 + $0x1a8] sm:$0xff]   ;;  %v1958_v1 = vld [vmem:[%s2401_s1 + $0x1b0] sm:$0xff]   ;;  %v1959_v2 = vld [vmem:[%s2401_s1 + $0x178] sm:$0xff]  }
  0x1a   : > { %1747 = vmatprep.subr.bf16.mxu1 %v1916_v21  ;;  %v1960_v3 = vld [vmem:[%s2401_s1 + $0x1f8] sm:$0xff]   ;;  %v397_v6 = vld [vmem:[%s2173_s12 + $0x10] sm:$0xff]  ;;  %v1109_v13 = vld [vmem:[%s2404_s4] sm:$0xff] }
  0x1b   : > { %v1961_v4 = vld [vmem:[%s2401_s1 + $0x138] sm:$0xff]   ;;  %v1623_v7 = vcombine.low %v397_v6, %v397_v6  ;;  %v1624_v8 = vcombine.high %v397_v6, %v397_v6  ;;  %v1110_v14 = vld [vmem:[%s2404_s4 + $0x8] sm:$0x3f]  ;;  %v1112_v15 = vsel %vm1111_vm1, %v1109_v13, -inf  ;;  %v1618_v19 = vld [vmem:[%s2402_s2] ss:$0 sm:$0xff] }
  0x1c   : > { %1726 = vmatpush3.bf16.msra.mxu0 %v1917_v22  ;;  %v1962_v5 = vld [vmem:[%s2401_s1 + $0x1b8] sm:$0xff]   ;;  %1113 = vmax.xlane.f32.xlu0 %v1112_v15  ;;  %v1116_v16 = vsel %vm1115_vm2, %v1110_v14, -inf }
  0x1d   : > { %1748 = vmatpush3.bf16.msra.mxu1 %v1918_v23  ;;  %1727 = vmatprep.subr.bf16.mxu0 %v1919_v24  ;;  %v398_v9 = vld [vmem:[%s2173_s12 + $0x18] sm:$0xff] }
  0x1e   : > { %1749 = vmatprep.subr.bf16.mxu1 %v1920_v25  ;;  %v1625_v10 = vcombine.low %v398_v9, %v398_v9  ;;  %v1626_v11 = vcombine.high %v398_v9, %v398_v9  ;;  %v1970_v15 = vld [vmem:[%s2405_s5 + $0x18] sm:$0xff]  }
  0x20   : > { %1728 = vmatpush3.bf16.msra.mxu0 %v1921_v26  ;;  %1117 = vmax.xlane.f32.xlu0 %v1116_v16  ;;  %v1971_v16 = vld [vmem:[%s2405_s5 + $0x20] sm:$0xff]  }
  0x21   : > { %1750 = vmatpush3.bf16.msra.mxu1 %v1922_v27  ;;  %1729 = vmatprep.subr.bf16.mxu0 %v1923_v28 }
  0x22   : > { %1751 = vmatprep.subr.bf16.mxu1 %v1924_v29 }
  0x24   : > { %1730 = vmatpush3.bf16.msra.mxu0 %v1925_v30 }
  0x25   : > { %1752 = vmatpush3.bf16.msra.mxu1 %v1926_v31  ;;  %1759 = vmatprep.subr.bf16.mxu0 %v1931_v38 }
  0x26   : > { %1781 = vmatprep.subr.bf16.mxu1 %v1932_v39 }
  0x27   : > { %979 = vmatmul.mubr.bf16.vlgmr.msra.gmra.mrb[0].mxu0 %v1619_v34 }
  0x28   : > { %1019 = vmatmul.mubr.bf16.vlgmr.msra.gmra.mrb[0].mxu1 %v1621_v36  ;;  %1760 = vmatpush3.bf16.msra.mxu0 %v1933_v40 }
  0x29   : > { %1782 = vmatpush3.bf16.msra.mxu1 %v1934_v41  ;;  %1761 = vmatprep.subr.bf16.mxu0 %v1935_v42  ;;  %v1106_v41 = vld [vmem:[%s2403_s3] sm:$0xff] }
  0x2a   : > { %1783 = vmatprep.subr.bf16.mxu1 %v1936_v43  ;;  %1058 = vmatprep.mubr.bf16.mxu0 %v1624_v8 }
  0x2b   : > { %1098 = vmatprep.mubr.bf16.mxu1 %v1626_v11  ;;  %v1967_v11 = vld [vmem:[%s2405_s5] sm:$0xff]  }
  0x2c   : > { %1762 = vmatpush3.bf16.msra.mxu0 %v1937_v44 }
  0x2d   : > { %1784 = vmatpush3.bf16.msra.mxu1 %v1938_v45  ;;  %1763 = vmatprep.subr.bf16.mxu0 %v1939_v46  ;;  %v1321_v46 = vld [vmem:[%s2407_s7] sm:$0x3] }
  0x2e   : > { %1785 = vmatprep.subr.bf16.mxu1 %v1940_v47 }
  0x30   : > { %1764 = vmatpush3.bf16.msra.mxu0 %v1941_v48 }
  0x31   : > { %1786 = vmatpush3.bf16.msra.mxu1 %v1942_v49  ;;  %1765 = vmatprep.subr.bf16.mxu0 %v1943_v50 }
  0x32   : > { %1787 = vmatprep.subr.bf16.mxu1 %v1944_v51 }
  0x34   : > { %1766 = vmatpush3.bf16.msra.mxu0 %v1945_v52 }
  0x35   : > { %1788 = vmatpush3.bf16.msra.mxu1 %v1946_v53  ;;  %1767 = vmatprep.subr.bf16.mxu0 %v1947_v54 }
  0x36   : > { %1789 = vmatprep.subr.bf16.mxu1 %v1948_v55 }
  0x38   : > { %1768 = vmatpush3.bf16.msra.mxu0 %v1949_v56 }
  0x39   : > { %1790 = vmatpush3.bf16.msra.mxu1 %v1950_v57  ;;  %1769 = vmatprep.subr.bf16.mxu0 %v1951_v58 }
  0x3a   : > { %1791 = vmatprep.subr.bf16.mxu1 %v1952_v59 }
  0x3c   : > { %1770 = vmatpush3.bf16.msra.mxu0 %v1953_v60 }
  0x3d   : > { %1792 = vmatpush3.bf16.msra.mxu1 %v1954_v61  ;;  %1771 = vmatprep.subr.bf16.mxu0 %v1955_v62 }
  0x3e   : > { %1793 = vmatprep.subr.bf16.mxu1 %v1956_v63 }
  0x40   : > { %1772 = vmatpush3.bf16.msra.mxu0 %v1957_v0 }
  0x41   : > { %1794 = vmatpush3.bf16.msra.mxu1 %v1958_v1  ;;  %1773 = vmatprep.subr.bf16.mxu0 %v1959_v2 }
  0x42   : > { %1795 = vmatprep.subr.bf16.mxu1 %v1960_v3 }
  0x44   : > { %1774 = vmatpush3.bf16.msra.mxu0 %v1961_v4 }
  0x45   : > { %1796 = vmatpush3.bf16.msra.mxu1 %v1962_v5  ;;  %1853 = vmatprep.subr.bf16.mxu0 %v2003_v12 }
  0x46   : > { %1827 = vmatprep.subr.bf16.mxu1 %v2003_v12 }
  0x47   : > { %1059 = vmatmul.mubr.bf16.vlgmr.msra.gmra.mrb[4].mxu0 %v1623_v7 }
  0x48   : > { %1099 = vmatmul.mubr.bf16.vlgmr.msra.gmra.mrb[4].mxu1 %v1625_v10  ;;  %1855 = vmatprep.mubr.msk.bf16.mxu0 %vm2004_vm0, %v2003_v12 }
  0x49   : > { %1829 = vmatprep.mubr.msk.bf16.mxu1 %vm2004_vm0, %v2003_v12 }
  0xa9   : > { %v1114_v47 = vpop.xlane.xlu0 %1113 }
  0xaa   : > { %v1119_v53 = vsub.f32 %v1109_v13, %v1114_v47  ;;  %v1968_v13 = vld [vmem:[%s2405_s5 + $0x8] sm:$0xff]  }
  0xac   : > { %v1121_v54 = vmul.f32 1.442695, %v1119_v53 }
  0xad   : > { %v1118_v48 = vpop.xlane.xlu0 %1117 }
  0xae   : > { %v1120_v49 = vsub.f32 %v1110_v14, %v1118_v48  ;;  %v1969_v14 = vld [vmem:[%s2405_s5 + $0x10] sm:$0xff]  }
  0xb0   : > { %v1123_v50 = vmul.f32 1.442695, %v1120_v49 }
  0xb2   : > { %1983 = vpow2.f32 %v1123_v50 }
  0xb3   : > { %1985 = vpow2.f32 %v1121_v54 }
  0xbc   : > { %v1984_v51 = vpop.eup %1983 }
  0xbd   : > { %v1128_v52 = vsel %vm1115_vm2, %v1984_v51, 0.0  ;;  %v1986_v58 = vpop.eup %1985 }
  0xbe   : > { %1129 = vadd.xlane.f32.xlu0 %v1128_v52  ;;  %v1125_v62 = vsel %vm1111_vm1, %v1986_v58, 0.0 }
  0xfa   : > { %v1731_v17 = vpop.f32.mrb[0].mxu0 }
  0xfb   : > { %v1753_v18 = vpop.f32.mrb[0].mxu1  ;;  %v1732_v20 = vpop.f32.mrb[1].mxu0 }
  0xfc   : > { %v1754_v21 = vpop.f32.mrb[1].mxu1  ;;  %v1733_v22 = vadd.f32 %v1732_v20, %v1731_v17  ;;  %v1734_v24 = vpop.f32.mrb[2].mxu0  ;;  %v1972_v17 = vld [vmem:[%s2405_s5 + $0x28] sm:$0xff]  }
  0xfd   : > { %v1755_v23 = vadd.f32 %v1754_v21, %v1753_v18  ;;  %v1756_v25 = vpop.f32.mrb[2].mxu1  ;;  %v1735_v26 = vpop.f32.mrb[3].mxu0  ;;  %v1973_v18 = vld [vmem:[%s2405_s5 + $0x30] sm:$0xff]  }
  0xfe   : > { %v1757_v27 = vpop.f32.mrb[3].mxu1  ;;  %v981_v28 = vadd.f32 %v1733_v22, %v1618_v19  ;;  %v1974_v19 = vld [vmem:[%s2405_s5 + $0x38] sm:$0xff]   ;;  %v1976_v25 = vld [vmem:[%s2408_s8 + $0x8] sm:$0xff]   ;;  %v1977_v26 = vld [vmem:[%s2408_s8 + $0x10] sm:$0xff]  }
  0xff   : > { %v1978_v27 = vld [vmem:[%s2408_s8 + $0x18] sm:$0xff]  }
 0x100   : > { %v1021_v29 = vadd.f32 %v1755_v23, %v981_v28  ;;  %v1975_v23 = vld [vmem:[%s2408_s8] sm:$0xff]  }
 0x101   : > { %v1979_v28 = vld [vmem:[%s2408_s8 + $0x20] sm:$0xff]  }
 0x11a   : > { %v1775_v30 = vpop.f32.mrb[4].mxu0 }
 0x11b   : > { %v1797_v31 = vpop.f32.mrb[4].mxu1  ;;  %v1776_v32 = vpop.f32.mrb[5].mxu0 }
 0x11c   : > { %v1798_v33 = vpop.f32.mrb[5].mxu1  ;;  %v1777_v34 = vadd.f32 %v1776_v32, %v1775_v30  ;;  %v1778_v36 = vpop.f32.mrb[6].mxu0  ;;  %v1981_v30 = vld [vmem:[%s2408_s8 + $0x30] sm:$0xff]  }
 0x11d   : > { %v1799_v35 = vadd.f32 %v1798_v33, %v1797_v31  ;;  %v1800_v37 = vpop.f32.mrb[6].mxu1  ;;  %v1779_v38 = vpop.f32.mrb[7].mxu0  ;;  %v1982_v36 = vld [vmem:[%s2408_s8 + $0x38] sm:$0xff]  }
 0x11e   : > { %v1801_v39 = vpop.f32.mrb[7].mxu1  ;;  %v1061_v40 = vadd.f32 %v1777_v34, %v1021_v29  ;;  %v1980_v29 = vld [vmem:[%s2408_s8 + $0x28] sm:$0xff]  }
 0x120   : > { %v1101_v42 = vadd.f32 %v1799_v35, %v1061_v40 }
 0x122   : > { %v1107_v43 = vadd.f32 %v1106_v41, %v1101_v42  ;;  %v1290_v42 = vlaneseq }
 0x124   : > { %v1108_v44 = vpack.c.bf16 %v1107_v43, %v1107_v43  ;;  %v1291_v43 = vshrl.u32 %v1290_v42, 7 }
 0x126   : > { %1854 = vmatpush3.bf16.xpose.msra.mxu0 %v1108_v44  ;;  %v1141_v45 = vsel %vm1139_vm3, %v1108_v44, 0  ;;  %v1292_v44 = vadd.s32 8, %v1291_v43  ;;  %v1297_v47 = vadd.s32 14, %v1291_v43 }
 0x127   : > { %1828 = vmatpush3.bf16.msra.mxu1 %v1141_v45  ;;  %1859 = vmatprep.subr.bf16.mxu0 %v2003_v12 }
 0x128   : > { %1833 = vmatprep.subr.bf16.mxu1 %v2003_v12 }
 0x12d   : > { %1856 = vmatmul.mubr.bf16.vlgmr.msra.gmra.mrb[8].mxu0 %v1321_v46  ;;  %v1294_v46 = vand.u32 127, %v1290_v42 }
 0x12e   : > { %1860 = vmatpush3.bf16.msra.mxu0 %v1141_v45  ;;  %1861 = vmatprep.mubr.msk.bf16.mxu0 %vm2004_vm0, %v2003_v12  ;;  %v1298_v45 = vadd.s32 14, %v1292_v44 }
 0x12f   : > { %1865 = vmatprep.subr.bf16.mxu0 %v2003_v12  ;;  %vm1296_vm5 = vcmp.eq.s32.totalorder %v1294_v46, %v1292_v44  ;;  %vm1295_vm7 = vcmp.eq.s32.totalorder %v1294_v46, %v1291_v43  ;;  %vm1299_vm8 = vcmp.eq.s32.totalorder %v1294_v46, %v1297_v47 }
 0x130   : > { %vm1300_vm6 = vcmp.eq.s32.totalorder %v1294_v46, %v1298_v45  ;;  %vm1301_vm10 = vmor %vm1295_vm7, %vm1299_vm8 }
 0x131   : > { %vm1302_vm9 = vmor %vm1296_vm5, %vm1300_vm6  ;;  %v1700_v50 = vsel %vm1301_vm10, 1.0, %v2003_v12 }
 0x132   : > { %v1701_v49 = vsel %vm1302_vm9, 1.0, %v2003_v12 }
 0x14b   : > { %v1130_v0 = vpop.xlane.xlu0 %1129 }
 0x14c   : > { %1987 = vrcp.f32 %v1130_v0 }
 0x156   : > { %v1988_v4 = vpop.eup %1987 }
 0x157   : > { %v1134_v8 = vmul.f32 %v1988_v4, %v1984_v51 }
 0x200   : > { %v1356_v55 = vpop.f32.mrb[8].mxu0 }
 0x201   : > { %v1362_v56 = vmul.f32 0.088388346, %v1356_v55  ;;  %v1857_v57 = vpop.f32.mrb[9].mxu0 }
 0x202   : > { %v1359_v59 = vpop.f32.mrb[10].mxu0 }
 0x203   : > { %v1858_v60 = vpop.f32.mrb[11].mxu0  ;;  %v1364_v61 = vsel %vm1363_vm4, %v1362_v56, -inf }
 0x204   : > { %1365 = vmax.xlane.f32.xlu1 %v1364_v61 }
 0x208   : > { %1126 = vadd.xlane.f32.xlu1 %v1125_v62 }
 0x291   : > { %v1366_v63 = vpop.xlane.xlu1 %1365 }
 0x292   : > { %v1367_v1 = vsub.f32 %v1362_v56, %v1366_v63  ;;  %v1318_v63 = vld [vmem:[%s2406_s6] sm:$0x1] }
 0x294   : > { %v1368_v2 = vmul.f32 1.442695, %v1367_v1  ;;  %v1703_v1 = vld [vmem:[%s2409_s9] ss:$0 sm:$0xff] }
 0x295   : > { %v1127_v3 = vpop.xlane.xlu1 %1126 }
 0x296   : > { %1989 = vpow2.f32 %v1368_v2 }
 0x297   : > { %1991 = vrcp.f32 %v1127_v3 }
 0x2a0   : > { %v1990_v5 = vpop.eup %1989 }
 0x2a1   : > { %v1992_v6 = vpop.eup %1991  ;;  %v1370_v7 = vsel %vm1363_vm4, %v1990_v5, 0.0 }
 0x2a2   : > { %v1132_v9 = vmul.f32 %v1992_v6, %v1986_v58  ;;  %1371 = vadd.xlane.f32.xlu1 %v1370_v7 }
 0x2a4   : > { %v1135_v10 = vpack.c.bf16 %v1134_v8, %v1132_v9 }
 0x2a6   : > { %1830 = vmatmul.mubr.msk.bf16.vlgmr.msra.gmra.mrb[8].mxu1 %vm1111_vm1, %v1135_v10 }
 0x2a7   : > { %1849 = vmatprep.mubr.msk.bf16.mxu1 %vm2004_vm0, %v2003_v12  ;;  %1834 = vmatpush3.bf16.msra.mxu1 %v1967_v11 }
 0x2a8   : > { %1835 = vmatprep.subr.bf16.mxu1 %v2003_v12 }
 0x2ab   : > { %1836 = vmatpush3.bf16.msra.mxu1 %v1968_v13 }
 0x2ac   : > { %1837 = vmatprep.subr.bf16.mxu1 %v2003_v12 }
 0x2af   : > { %1838 = vmatpush3.bf16.msra.mxu1 %v1969_v14 }
 0x2b0   : > { %1839 = vmatprep.subr.bf16.mxu1 %v2003_v12 }
 0x2b3   : > { %1840 = vmatpush3.bf16.msra.mxu1 %v1970_v15 }
 0x2b4   : > { %1841 = vmatprep.subr.bf16.mxu1 %v2003_v12 }
 0x2b7   : > { %1842 = vmatpush3.bf16.msra.mxu1 %v1971_v16 }
 0x2b8   : > { %1843 = vmatprep.subr.bf16.mxu1 %v2003_v12 }
 0x2bb   : > { %1844 = vmatpush3.bf16.msra.mxu1 %v1972_v17 }
 0x2bc   : > { %1845 = vmatprep.subr.bf16.mxu1 %v2003_v12 }
 0x2bf   : > { %1846 = vmatpush3.bf16.msra.mxu1 %v1973_v18 }
 0x2c0   : > { %1847 = vmatprep.subr.bf16.mxu1 %v2003_v12 }
 0x2c3   : > { %1848 = vmatpush3.bf16.msra.mxu1 %v1974_v19 }
 0x32f   : > { %v1372_v20 = vpop.xlane.xlu1 %1371 }
 0x330   : > { %1993 = vrcp.f32 %v1372_v20 }
 0x33a   : > { %v1994_v21 = vpop.eup %1993 }
 0x33b   : > { %v1374_v22 = vmul.f32 %v1994_v21, %v1990_v5 }
 0x33d   : > { %v1375_v24 = vpack.c.bf16 %v1374_v22, %v1374_v22 }
 0x33f   : > { %1862 = vmatmul.mubr.msk.bf16.vlgmr.msra.gmra.mrb[12].mxu0 %vm1111_vm1, %v1375_v24 }
 0x340   : > { %1866 = vmatpush3.bf16.msra.mxu0 %v1975_v23  ;;  %1881 = vmatprep.mubr.msk.bf16.mxu0 %vm2004_vm0, %v2003_v12 }
 0x341   : > { %1867 = vmatprep.subr.bf16.mxu0 %v2003_v12 }
 0x344   : > { %1868 = vmatpush3.bf16.msra.mxu0 %v1976_v25 }
 0x345   : > { %1869 = vmatprep.subr.bf16.mxu0 %v2003_v12 }
 0x348   : > { %1870 = vmatpush3.bf16.msra.mxu0 %v1977_v26 }
 0x349   : > { %1871 = vmatprep.subr.bf16.mxu0 %v2003_v12 }
 0x34c   : > { %1872 = vmatpush3.bf16.msra.mxu0 %v1978_v27 }
 0x34d   : > { %1873 = vmatprep.subr.bf16.mxu0 %v2003_v12 }
 0x350   : > { %1874 = vmatpush3.bf16.msra.mxu0 %v1979_v28 }
 0x351   : > { %1875 = vmatprep.subr.bf16.mxu0 %v2003_v12 }
 0x354   : > { %1876 = vmatpush3.bf16.msra.mxu0 %v1980_v29 }
 0x355   : > { %1877 = vmatprep.subr.bf16.mxu0 %v2003_v12 }
 0x358   : > { %1878 = vmatpush3.bf16.msra.mxu0 %v1981_v30 }
 0x359   : > { %1879 = vmatprep.subr.bf16.mxu0 %v2003_v12 }
 0x35c   : > { %1880 = vmatpush3.bf16.msra.mxu0 %v1982_v36 }
 0x379   : > { %v1177_v31 = vpop.f32.mrb[8].mxu1 }
 0x37a   : > { %v1831_v32 = vpop.f32.mrb[9].mxu1 }
 0x37b   : > { %v1180_v33 = vpop.f32.mrb[10].mxu1 }
 0x37c   : > { %v1184_v34 = vpack.c.bf16 %v1180_v33, %v1177_v31  ;;  %v1832_v35 = vpop.f32.mrb[11].mxu1 }
 0x37e   : > { %1850 = vmatmul.mubr.bf16.vlgmr.msra.gmra.mrb[12].mxu1 %v1184_v34 }
 0x412   : > { %v1413_v37 = vpop.f32.mrb[12].mxu0 }
 0x413   : > { %v1419_v38 = vpack.c.bf16 %v1413_v37, %v1413_v37  ;;  %v1863_v39 = vpop.f32.mrb[13].mxu0 }
 0x414   : > { %v1416_v40 = vpop.f32.mrb[14].mxu0 }
 0x415   : > { %v1864_v41 = vpop.f32.mrb[15].mxu0  ;;  %1882 = vmatmul.mubr.bf16.vlgmr.msra.gmra.mrb[16].mxu0 %v1419_v38 }
 0x451   : > { %v1283_v48 = vpop.f32.mrb[12].mxu1 }
 0x452   : > { %v1851_v51 = vpop.f32.mrb[13].mxu1  ;;  %v1307_v55 = vmul.f32 %v1700_v50, %v1283_v48 }
 0x453   : > { %v1286_v52 = vpop.f32.mrb[14].mxu1 }
 0x454   : > { %v1308_v53 = vmul.f32 %v1701_v49, %v1286_v52  ;;  %v1852_v54 = vpop.f32.mrb[15].mxu1 }
 0x456   : > { %v1310_v56 = vsel %vm1309_vm11, %v1308_v53, 0.0 }
 0x457   : > { %v1311_v57 = vadd.f32 %v1310_v56, %v1307_v55 }
 0x459   : > { %v1312_v58 = vrot.slane %v1311_v57, 4 }
 0x45b   : > { %v1313_v59 = vadd.f32 %v1312_v58, %v1311_v57 }
 0x45d   : > { %v1314_v60 = vrot.slane %v1313_v59, 2 }
 0x45f   : > { %v1315_v61 = vadd.f32 %v1314_v60, %v1313_v59 }
 0x461   : > { %v1316_v62 = vrot.slane %v1315_v61, 1 }
 0x463   : > { %v1317_v12 = vadd.f32 %v1316_v62, %v1315_v61 }
 0x465   : > { %v1319_v0 = vadd.f32 %v1318_v63, %v1317_v12 }
 0x467   : > { %1320 = vst [vmem:[%s393_s30] sm:$0x1] %v1319_v0 }
 0x4e8   : > { %v1525_v2 = vpop.f32.mrb[16].mxu0 }
 0x4e9   : > { %v1526_v3 = vadd.f32 %v1703_v1, %v1525_v2  ;;  %v1883_v4 = vpop.f32.mrb[17].mxu0 }
 0x4ea   : > { %v1528_v5 = vpop.f32.mrb[18].mxu0 }
 0x4eb   : > { %1531 = vst [vmem:[%s390_s19] sm:$0xf] %v1526_v3  ;;  %v1884_v6 = vpop.f32.mrb[19].mxu0 }
 0x4ec PF: > { %s22_s17 = sadd.s32 1, %s2001_s17  }
 0x4ed   : > { %p19_p4 = scmp.ge.s32.totalorder %s22_s17, 4  }
 0x4ef   :  { %21 = sbr.rel (!%p19_p4) target bundleno = 1 (0x1), region = 102 }

// kernel: squeeze.1
= control target key start
LH: loop header
LB: loop body
LE: loop exit
PB: predicated region body
PF: predicated region fallthrough
CT: control target
= control target key end

     0   :  { %s90_s0 = inlined_call_operand.vmem [shape: f32[2,28], index: 0, kind: input, shape index: {}]   ;;  %s91_s1 = inlined_call_operand.hbm [shape: f32[2,2,14], index: 1, kind: output, shape index: {}]  }
   0x1   :  { %v5_v0 = vld [vmem:[%s90_s0] sm:$0x3] }
   0x2   :  { %2 = vsyncpa [#allocation1], 0  ;;  %6 = vst [vmem:[#allocation3] sm:$0x3] %v5_v0  ;;  %vm8_vm0 = vcmask 113664   ;;  %s63_s0 = smov 114  }
   0x3   :  { %s64_s8 = smov [#allocation0]  }
   0x4   :  { %s31_s9 = sshll.u32 %s64_s8, 4  ;;  %s32_s9 = int_to_ptr.vmem [resolvable:$true] %s31_s9 }
   0x5   :  { %s39_s10 = scalar_lea.vmem %s32_s9, 64  ;;  %p44_p1 = scmp.lt.s32.totalorder %s32_s9, %s32_s9 }
   0x6   :  { %p40_p0 = scmp.ne.s32.totalorder %s32_s9, %s39_s10  ;;  %p45_p2 = scmp.lt.s32.totalorder %s39_s10, %s39_s10 }
   0x8   :  { %p46_p3 = por %p45_p2, %p44_p1 }
   0x9   :  { %v10_v1 = vld [vmem:[#allocation3] sm:$0x3]  }
   0xa   :  { %v7_v2 = vld [vmem:[#allocation3] sm:$0x3]   ;;  %11 = vrot.lane.b32.xlu0 %v10_v1, %s63_s0  ;;  %p47_p4 = pnand %p46_p3, %p40_p0 }
   0xb   :  { %9 = vst.msk [vmem:[#allocation2] ss:$8 sm:$0x3] %vm8_vm0, %v7_v2  }
  0x7c   :  { %v12_v3 = vpop.permute.xlu0 %11  }
  0x7d   :  { %15 = vst.msk [vmem:[#allocation2 + $0x1] ss:$8 sm:$0x3] %vm8_vm0, %v12_v3  }
  0x84   :  { %v19_v4 = vld [vmem:[#allocation2] sm:$0x3]  ;;  %v23_v5 = vld [vmem:[#allocation2 + $0x8] sm:$0x3] }
  0x85   :  { %21 = vst [vmem:[#allocation0] sm:$0x3] %v19_v4  ;;  %26 = vst [vmem:[#allocation0 + $0x2] sm:$0x3] %v23_v5 }
  0x86   :  { %50 = shalt.err (!%p47_p4)
}
  0x87   :  { %s51_s13 = scalar_lea.hbm %s91_s1, 64 }
  0x88   :  { %p52_p5 = scmp.ne.s32.totalorder %s91_s1, %s51_s13  ;;  %p55_p6 = scmp.lt.u32.totalorder %s51_s13, %s91_s1 }
  0x8a   :  { %p57_p7 = pnand %p55_p6, %p52_p5 }
  0x8c   :  { %60 = shalt.err (!%p57_p7)
}
  0x8d   :  { %34 = dma.vmem_to_hbm [thread:$0]  %s32_s9, 64, %s91_s1, [#allocation1]  }
  0x8e   :  { %61 = dma.done.wait [#allocation1], 64  }
  0x8f   :  { %62 = vsyncadd [#allocation1], 4294967232 }
  0x90   :  { %36 = vsyncpa [#allocation1], 1 }

// kernel: my_embedding_forward.3
= control target key start
LH: loop header
LB: loop body
LE: loop exit
PB: predicated region body
PF: predicated region fallthrough
CT: control target
= control target key end

     0   :  { %s516_s0 = inlined_call_operand.vmem [shape: s32[16], index: 0, kind: input, shape index: {}]   ;;  %s517_s1 = inlined_call_operand.vmem [shape: f32[266,128], index: 1, kind: input, shape index: {}]   ;;  %s518_s2 = inlined_call_operand.hbm [shape: f32[2,8,128], index: 2, kind: output, shape index: {}]  }
   0x1   :  { %s7_s11 = sshll.u32 %s516_s0, 4  ;;  %s8_s11 = int_to_ptr.vmem [resolvable:$true] %s7_s11 }
   0x2   :  { %s288_s12 = scalar_lea.vmem %s8_s11, 16  ;;  %p293_p1 = scmp.lt.s32.totalorder %s8_s11, %s8_s11 }
   0x3   :  { %p289_p0 = scmp.ne.s32.totalorder %s8_s11, %s288_s12  ;;  %p294_p2 = scmp.lt.s32.totalorder %s288_s12, %s288_s12 }
   0x5   :  { %p295_p3 = por %p294_p2, %p293_p1 }
   0x7   :  { %p296_p4 = pnand %p295_p3, %p289_p0 }
   0x9   :  { %299 = shalt.err (!%p296_p4)  }
   0xa   :  { %s366_s13 = smov [#allocation3]  }
   0xb   :  { %10 = dma.vmem_to_smem %s8_s11, 16, %s366_s13, [#allocation2] }
   0xc   :  { %344 = dma.done.wait [#allocation2], 16 }
   0xd   :  { %345 = vsyncadd [#allocation2], 4294967280 }
   0xe   :  { %12 = sfence }
   0xf   :  { %13 = vsyncpa [#allocation5], 0 }
  0x10   :  { %15 = vsyncpa [#allocation5 + $0x1], 0  ;;  %s386_s14 = smov 0   ;;  %s388_s15 = smov 0  }
  0x11   :  { %s390_s0 = smov 0   ;;  %s392_s16 = smov 0  }
  0x12 LB: > { %521 = sst [smem:[#allocation8_spill]] %s360_s0  ;;  %s407_s17 = sadd.s32 4294967295, %s364_s16   ;;  %s364_s16 = sphi %s392_s16, %s530_s16   ;;  %s360_s0 = sphi %s390_s0, %s527_s0   ;;  %s356_s15 = sphi %s388_s15, %s529_s15   ;;  %s352_s14 = sphi %s386_s14, %s528_s14  }
  0x13   : > { %s239_s18 = sadd.s32 4294967294, %s364_s16   ;;  %s411_s19 = sadd.s32 1, %s364_s16  }
  0x14   : > { %s49_s20 = sadd.s32 1, %s360_s0  ;;  %s46_s21 = ssub.s32 %s364_s16, %s411_s19 }
  0x15   : > { %p59_p5 = scmp.ne.s32.totalorder %s360_s0, %s356_s15  ;;  %p47_p6 = scmp.eq.s32.totalorder %s46_s21, 0 }
  0x16   : > { %p60_p7 = scmp.eq.s32.totalorder %s407_s17, 1  ;;  %p65_p8 = scmp.ne.s32.totalorder %s356_s15, %s352_s14 }
  0x17   : > { %p66_p9 = scmp.eq.s32.totalorder %s239_s18, 1  ;;  %p241_p12 = scmp.ge.s32.totalorder %s364_s16, 1 }
  0x18   : > { %s422_s22 = scalar_select %p47_p6, %s360_s0, %s49_s20  }
  0x19   : > { %p424_p10 = por %p60_p7, %p59_p5  ;;  %p428_p11 = por %p66_p9, %p65_p8 }
  0x1a   : > { %522 = sst [smem:[#allocation9_spill]] %s422_s22  ;;  %p87_p13 = scmp.lt.s32.totalorder %s364_s16, 3 }
  0x1c   : > { %p88_p0 = pnand %p241_p12, %p87_p13 }
  0x1d   : > { %s519_s25 = sand.u32 (!%p88_p0), 1, %s356_s15   ;;  %s243_s26 = sshll.u32 (!%p88_p0), %s407_s17, 3  ;;  %vm155_vm0 = vcmask (!%p88_p0), 1040384   ;;  %vm157_vm1 = vcmask (!%p88_p0), 1041408   ;;  %vm159_vm2 = vcmask (!%p88_p0), 1042432   ;;  %vm161_vm3 = vcmask (!%p88_p0), 1043456  }
  0x1e   : > { %91 = sbr.rel (%p88_p0) target bundleno = 69 (0x45), region = 24  ;;  %s103_s27 = sld [smem:[#allocation3 + %s243_s26]] (!%p88_p0)  ;;  %vm163_vm4 = vcmask (!%p88_p0), 1044480   ;;  %vm165_vm5 = vcmask (!%p88_p0), 1045504   ;;  %vm167_vm6 = vcmask (!%p88_p0), 1046528  }
  0x1f   : > { %s438_s28 = sshll.u32 (!%p88_p0), %s519_s25, 3  ;;  %s106_s29 = sadd.s32 (!%p88_p0), 1, %s243_s26 }
  0x20   : > { %s107_s30 = sld [smem:[#allocation3 + %s106_s29]] (!%p88_p0)  ;;  %s110_s3 = sadd.s32 (!%p88_p0), 2, %s243_s26 }
  0x21   : > { %s111_s4 = sld [smem:[#allocation3 + %s110_s3]] (!%p88_p0)  ;;  %s114_s5 = sadd.s32 (!%p88_p0), 3, %s243_s26 }
  0x22   : > { %s115_s6 = sld [smem:[#allocation3 + %s114_s5]] (!%p88_p0)  ;;  %s118_s7 = sadd.s32 (!%p88_p0), 4, %s243_s26 }
  0x23   : > { %s119_s8 = sld [smem:[#allocation3 + %s118_s7]] (!%p88_p0)  ;;  %s122_s9 = sadd.s32 (!%p88_p0), 5, %s243_s26 }
  0x24   : > { %s104_s12 = scalar_lea.vmem (!%p88_p0), %s517_s1, %s103_s27  ;;  %s123_s13 = sld [smem:[#allocation3 + %s122_s9]] (!%p88_p0) }
  0x25   : > { %s126_s18 = sadd.s32 6, %s243_s26  ;;  %s130_s20 = sadd.s32 7, %s243_s26  ;;  %v105_v0 = vld [vmem:[%s104_s12] sm:$0x1] }
  0x26   : > { %s108_s25 = scalar_lea.vmem %s517_s1, %s107_s30  ;;  %s127_s0 = sld [smem:[#allocation3 + %s126_s18]] }
  0x27   : > { %v109_v1 = vld [vmem:[%s108_s25] sm:$0x1]  ;;  %s112_s5 = scalar_lea.vmem %s517_s1, %s111_s4  ;;  %s449_s7 = sld [smem:[#allocation3 + %s130_s20]] }
  0x28   : > { %v113_v2 = vld [vmem:[%s112_s5] sm:$0x1]  ;;  %s116_s9 = scalar_lea.vmem %s517_s1, %s115_s6  ;;  %v135_v3 = vrot.slane %v109_v1, 7  ;;  %s101_s18 = scalar_lea.vmem [#allocation4], %s438_s28 }
  0x29   : > { %v117_v4 = vld [vmem:[%s116_s9] sm:$0x1]  ;;  %s120_s25 = scalar_lea.vmem %s517_s1, %s119_s8  ;;  %v138_v5 = vrot.slane %v113_v2, 6  ;;  %s184_s20 = sshll.u32 %s101_s18, 4  ;;  %s469_s20 = int_to_ptr.vmem [resolvable:$true] %s184_s20 }
  0x2a   : > { %v121_v6 = vld [vmem:[%s120_s25] sm:$0x1]  ;;  %s124_s11 = scalar_lea.vmem %s517_s1, %s123_s13  ;;  %v141_v7 = vrot.slane %v117_v4, 5  ;;  %v156_v8 = vsel %vm155_vm0, %v105_v0, %v135_v3  ;;  %s245_s3 = sshll.u32 %s407_s17, 7 }
  0x2b   : > { %v125_v9 = vld [vmem:[%s124_s11] sm:$0x1]  ;;  %v144_v10 = vrot.slane %v121_v6, 4  ;;  %v158_v11 = vsel %vm157_vm1, %v156_v8, %v138_v5  ;;  %s474_s5 = scalar_lea.hbm %s518_s2, %s245_s3  ;;  %s300_s10 = scalar_lea.vmem %s469_s20, 128 }
  0x2c   : > { %s128_s8 = scalar_lea.vmem %s517_s1, %s127_s0  ;;  %v147_v12 = vrot.slane %v125_v9, 3  ;;  %v160_v13 = vsel %vm159_vm2, %v158_v11, %v141_v7  ;;  %p301_p1 = scmp.ne.s32.totalorder %s469_s20, %s300_s10 }
  0x2d   : > { %v129_v14 = vld [vmem:[%s128_s8] sm:$0x1]  ;;  %s132_s29 = scalar_lea.vmem %s517_s1, %s449_s7  ;;  %v162_v15 = vsel %vm161_vm3, %v160_v13, %v144_v10  ;;  %s525_s7 = sand.u32 1, %s356_s15  }
  0x2e   : > { %v133_v16 = vld [vmem:[%s132_s29] sm:$0x1]  ;;  %v150_v17 = vrot.slane %v129_v14, 2  ;;  %v164_v18 = vsel %vm163_vm4, %v162_v15, %v147_v12  ;;  %s171_s17 = scalar_lea.sflag [#allocation5], %s525_s7  ;;  %p302_p2 = pnand %p301_p1, %p424_p10 }
  0x2f   : > { %v153_v19 = vrot.slane %v133_v16, 1  ;;  %s367_s27 = smov [#allocation4]  }
  0x30   : > { %v166_v20 = vsel %vm165_vm5, %v164_v18, %v150_v17  ;;  %p303_p3 = pneg %p302_p2  ;;  %s304_s9 = sshll.u32 %s367_s27, 4  ;;  %s305_s9 = int_to_ptr.vmem [resolvable:$false] %s304_s9 }
  0x31   : > { %v168_v21 = vsel %vm167_vm6, %v166_v20, %v153_v19  ;;  %s306_s22 = scalar_lea.vmem %s305_s9, 256  ;;  %p307_p4 = scmp.lt.s32.totalorder %s469_s20, %s305_s9 }
  0x32   : > { %169 = vst [vmem:[%s101_s18] sm:$0xff] %v168_v21  ;;  %p308_p5 = scmp.lt.s32.totalorder %s306_s22, %s300_s10 }
  0x34   : > { %p309_p6 = por %p308_p5, %p307_p4 }
  0x36   : > { %p310_p7 = pnand %p309_p6, %p303_p3 }
  0x38   : > { %313 = shalt.err (!%p310_p7)
}
  0x39   : > { %s314_s26 = scalar_lea.hbm %s474_s5, 128  ;;  %s318_s4 = scalar_lea.hbm %s518_s2, 256 }
  0x3a   : > { %p315_p8 = scmp.ne.s32.totalorder %s474_s5, %s314_s26  ;;  %p319_p13 = scmp.lt.u32.totalorder %s474_s5, %s518_s2 }
  0x3b   : > { %p320_p0 = scmp.lt.u32.totalorder %s318_s4, %s314_s26  ;;  %p322_p2 = scmp.lt.u32.totalorder %s314_s26, %s474_s5 }
  0x3c   : > { %p316_p9 = pnand %p315_p8, %p424_p10 }
  0x3d   : > { %p321_p1 = por %p320_p0, %p319_p13 }
  0x3e   : > { %p317_p12 = pneg %p316_p9 }
  0x3f   : > { %p323_p3 = por %p322_p2, %p321_p1 }
  0x41   : > { %p324_p4 = pnand %p323_p3, %p317_p12 }
  0x43   : > { %327 = shalt.err (!%p324_p4)
}
  0x44   : > { %248 = dma.vmem_to_hbm [thread:$0]  (%p424_p10), %s469_s20, 128, %s474_s5, %s171_s17  }
  0x45 PF: > { %p254_p5 = scmp.ge.s32.totalorder %s364_s16, 2  ;;  %s196_s12 = sand.u32 1, %s352_s14  }
  0x46   : > { %s197_s8 = scalar_lea.sflag [#allocation5], %s196_s12 }
  0x47   : > { %p251_p6 = pnand %p254_p5, %p428_p11 }
  0x49   : > { %347 = dma.done.wait (!%p251_p6), %s197_s8, 128  }
  0x4a   : > { %349 = vsyncadd (!%p251_p6), %s197_s8, 4294967168  ;;  %s526_s18 = sld [smem:[#allocation8_spill]]  ;;  %s527_s0 = sld [smem:[#allocation9_spill]] }
  0x4b   : > { %p18_p7 = scmp.ge.s32.totalorder %s411_s19, 4   ;;  %s528_s14 = smov %s356_s15 }
  0x4c   : > { %s530_s16 = smov %s411_s19 }
  0x4d   :  { %20 = sbr.rel (!%p18_p7) target bundleno = 18 (0x12), region = 64 }
  0x50   : > { %s529_s15 = smov %s526_s18 }
  0x54   :  { %202 = vsyncpa [#allocation5], 1 }
  0x55   :  { %204 = vsyncpa [#allocation5 + $0x1], 1 }

</bundles_post_ra>
